<compile_context>
chip_gen: v6e
topology: v6e:2x2x1
jax: 0.10.0
libtpu: 0.0.40
codegen_flags: <defaults>
</compile_context>

<pallas_src>
import functools
import math

import jax
import jax.numpy as jnp
from jax.experimental import pallas as pl
from jax.experimental.pallas import tpu as pltpu


def _make_perceptron_kernel(act_type: str, D: int, TK: int):
    """Kernel body with activation / feature-dim masking baked in statically."""
    mask_k = (D % TK) != 0  # only possible when the feature dim is split

    def kernel(x_ref, w_ref, b_ref, o_ref):
        k = pl.program_id(1)

        # o_ref block index is constant across k -> it stays resident in VMEM
        # and doubles as the f32 accumulator (lane-dense (1, 1, TB)).
        @pl.when(k == 0)
        def _():
            o_ref[...] = jnp.zeros_like(o_ref)

        x = x_ref[...].astype(jnp.float32)      # (TB, TK), cast in vregs
        w = w_ref[...].astype(jnp.float32)      # (1, TK), resident-ish (tiny)
        prod = x * w                            # VPU broadcast multiply
        if mask_k:
            # Partial last feature chunk: zero out-of-range columns so garbage
            # reads cannot contaminate valid rows.
            col = k * TK + jax.lax.broadcasted_iota(jnp.int32, prod.shape, 1)
            prod = jnp.where(col < D, prod, 0.0)

        part = jnp.sum(prod, axis=-1)           # (TB,), XLU lane reduction
        o_ref[...] += part.reshape(o_ref.shape)  # lane-dense accumulate

        @pl.when(k == pl.num_programs(1) - 1)
        def _():
            z = o_ref[...] + b_ref[0]           # scalar bias from SMEM
            if act_type == "Sigmoid":
                z = jax.nn.sigmoid(z)           # exp/recip -> EUP slot
            elif act_type == "Tanh":
                z = jnp.tanh(z)
            elif act_type == "SELU":
                alpha = 1.6732632423543772848170429916717
                scale = 1.0507009873554804934193349852946
                # Clamp exp argument so the unselected branch never makes inf.
                z = scale * jnp.where(
                    z > 0, z, alpha * (jnp.exp(jnp.minimum(z, 0.0)) - 1.0)
                )
            elif act_type == "ReLU":
                z = jnp.maximum(z, 0.0)
            # act_type == 'None' -> identity
            o_ref[...] = z

    return kernel


@functools.partial(jax.jit, static_argnames=("act_type", "x_buffer_bytes"))
def perceptron_forward(x, w, b, act_type="Sigmoid", x_buffer_bytes=6 * 1024 * 1024):
    """x: (..., D), w: (1, D) f32, b: (1,) f32 -> (..., 1) f32.

    Matches PyTorch nn.Linear(input_size, 1) + activation semantics.
    `x_buffer_bytes` is the per-pipeline-buffer VMEM budget for the x tile
    (exposed mainly so tests can force the feature-dim-split path).
    """
    orig_shape = x.shape
    D = orig_shape[-1]
    x2 = x.reshape(-1, D)                       # keep native dtype (no HBM upcast pass)
    B = x2.shape[0]
    w2 = w.reshape(1, D).astype(jnp.float32)
    b1 = b.reshape(1).astype(jnp.float32)

    itemsize = jnp.dtype(x2.dtype).itemsize
    sublane = max(8, 32 // max(itemsize, 1))    # 8 (f32), 16 (bf16), 32 (int8/fp8)

    # Only pad when the batch is smaller than one sublane group (tiny copy).
    if B < sublane:
        x2 = jnp.pad(x2, ((0, sublane - B), (0, 0)))
        B_eff = sublane
    else:
        B_eff = B

    budget = int(x_buffer_bytes)
    # Feature tile: full D if even a minimal-row tile fits the budget,
    # otherwise split D into 128-lane-aligned chunks.
    if sublane * D * itemsize <= budget:
        TK = D
    else:
        TK = max(128, ((budget // (sublane * itemsize)) // 128) * 128)
    num_k = -(-D // TK)

    # Batch tile: as many rows as the budget allows (multiple of 128 when
    # large, never more than the batch, capped so the lane-dense output buffer
    # stays small). No hard 512-row cap.
    rows = max(sublane, ((budget // (TK * itemsize)) // sublane) * sublane)
    if rows >= 128:
        rows = (rows // 128) * 128
    rows = min(rows, 65536)
    cap = (B_eff // sublane) * sublane
    TB = max(sublane, min(rows, cap))
    num_b = -(-B_eff // TB)

    kernel = _make_perceptron_kernel(act_type, D, TK)
    out = pl.pallas_call(
        kernel,
        out_shape=jax.ShapeDtypeStruct((num_b, 1, TB), jnp.float32),
        grid=(num_b, num_k),
        in_specs=[
            # x: (TB, TK) tiles, auto double-buffered, native dtype.
            pl.BlockSpec((TB, TK), lambda i, k: (i, k)),
            # w: one feature chunk at a time (whole row when no split).
            pl.BlockSpec((1, TK), lambda i, k: (0, k)),
            # bias: scalar in SMEM.
            pl.BlockSpec(memory_space=pltpu.MemorySpace.SMEM),
        ],
        # Lane-dense output blocks: (1, 1, TB) -> unmasked vst, ~16x less VMEM
        # than a (TB, 1) layout.
        out_specs=pl.BlockSpec((1, 1, TB), lambda i, k: (i, 0, 0)),
        compiler_params=pltpu.CompilerParams(
            dimension_semantics=("parallel", "arbitrary"),
            vmem_limit_bytes=32 * 1024 * 1024,  # safe on v5e/v6e/v7x
        ),
    )(x2, w2, b1)

    out = out.reshape(num_b * TB)[:B]
    return out.reshape(orig_shape[:-1] + (1,))


def init_perceptron_params(key, input_size):
    """Deterministic init mimicking PyTorch nn.Linear default (U(-k, k), k=1/sqrt(in))."""
    kw, kb = jax.random.split(key)
    bound = 1.0 / math.sqrt(input_size)
    w = jax.random.uniform(kw, (1, input_size), jnp.float32, -bound, bound)
    b = jax.random.uniform(kb, (1,), jnp.float32, -bound, bound)
    return w, b


def _reference(x, w, b, act_type):
    z = x.astype(jnp.float32) @ w.T + b
    if act_type == "Sigmoid":
        return jax.nn.sigmoid(z)
    if act_type == "Tanh":
        return jnp.tanh(z)
    if act_type == "SELU":
        return jax.nn.selu(z)
    if act_type == "ReLU":
        return jax.nn.relu(z)
    return z


if __name__ == "__main__":
    key = jax.random.PRNGKey(0)
    kx, kp, kx2, kx3 = jax.random.split(key, 4)

    batch, input_size = 16, 32
    x = jax.random.normal(kx, (batch, input_size), dtype=jnp.float32)
    w, b = init_perceptron_params(kp, input_size)

    # Check every activation branch.
    for act_type in ("Sigmoid", "Tanh", "SELU", "ReLU", "None"):
        out = perceptron_forward(x, w, b, act_type=act_type)
        jax.block_until_ready(out)
        ref = _reference(x, w, b, act_type)
        assert out.shape == (batch, 1), act_type
        assert jnp.allclose(out, ref, atol=1e-5, rtol=1e-5), act_type

    # Ragged batch: partial last batch tile, no wrapper-side jnp.pad.
    x2 = jax.random.normal(kx2, (13, input_size), dtype=jnp.float32)
    out2 = perceptron_forward(x2, w, b, act_type="Sigmoid")
    jax.block_until_ready(out2)
    ref2 = _reference(x2, w, b, "Sigmoid")
    assert out2.shape == (13, 1)
    assert jnp.allclose(out2, ref2, atol=1e-5, rtol=1e-5)

    # bf16 input: DMA'd in native dtype, cast to f32 inside the kernel.
    xb = x.astype(jnp.bfloat16)
    out_b = perceptron_forward(xb, w, b, act_type="Sigmoid")
    jax.block_until_ready(out_b)
    ref_b = _reference(xb, w, b, "Sigmoid")
    assert out_b.shape == (batch, 1)
    assert jnp.allclose(out_b, ref_b, atol=1e-5, rtol=1e-5)

    # Feature-dim-split path (large-D robustness): force it with a tiny budget;
    # D % TK != 0 also exercises the partial-chunk masking.
    D_big = 500
    x3 = jax.random.normal(kx3, (batch, D_big), dtype=jnp.float32)
    w3, b3 = init_perceptron_params(kp, D_big)
    out3 = perceptron_forward(x3, w3, b3, act_type="Tanh", x_buffer_bytes=4096)
    jax.block_until_ready(out3)
    ref3 = _reference(x3, w3, b3, "Tanh")
    assert out3.shape == (batch, 1)
    assert jnp.allclose(out3, ref3, atol=1e-4, rtol=1e-4)

    print("KERNEL_OK")
</pallas_src>

<mosaic_0001>
module attributes {stable_mosaic.version = 11 : i64} {
  func.func @kernel(%arg0: i32, %arg1: i32, %arg2: memref<16x32xf32, #tpu.memory_space<vmem>>, %arg3: memref<1x32xf32, #tpu.memory_space<vmem>>, %arg4: memref<1xf32, #tpu.memory_space<smem>>, %arg5: memref<1x1x16xf32, #tpu.memory_space<vmem>>) attributes {dimension_semantics = [#tpu.dimension_semantics<parallel>, #tpu.dimension_semantics<arbitrary>], iteration_bounds = array<i64: 1, 1>, scalar_prefetch = 0 : i64, scratch_operands = 0 : i64, tpu.core_type = #tpu.core_type<tc>, window_params = [{transform_indices = @transform_0, window_bounds = array<i64: 16, 32>}, {transform_indices = @transform_1, window_bounds = array<i64: 1, 32>}, {transform_indices = @transform_2, window_bounds = array<i64: 1>}, {transform_indices = @transform_3, window_bounds = array<i64: 1, 1, 16>}]} {
    %c0_i32 = arith.constant 0 : i32
    %0 = arith.cmpi eq, %arg1, %c0_i32 : i32
    %1 = arith.extui %0 : i1 to i32
    %c0_i32_0 = arith.constant 0 : i32
    %2 = arith.cmpi ne, %1, %c0_i32_0 : i32
    scf.if %2 {
      %cst_12 = arith.constant 0.000000e+00 : f32
      %15 = vector.broadcast %cst_12 : f32 to vector<1x1x16xf32>
      %c0_13 = arith.constant 0 : index
      %c0_14 = arith.constant 0 : index
      %c0_15 = arith.constant 0 : index
      %16 = vector.load %arg5[%c0_13, %c0_14, %c0_15] : memref<1x1x16xf32, #tpu.memory_space<vmem>>, vector<1x1x16xf32>
      tpu.vector_store %arg5[%c0_13, %c0_14, %c0_15], %15 {strides = array<i32>} : memref<1x1x16xf32, #tpu.memory_space<vmem>>, vector<1x1x16xf32>,
    } else {
    }
    %c0 = arith.constant 0 : index
    %c0_1 = arith.constant 0 : index
    %3 = vector.load %arg2[%c0, %c0_1] : memref<16x32xf32, #tpu.memory_space<vmem>>, vector<16x32xf32>
    %c0_2 = arith.constant 0 : index
    %c0_3 = arith.constant 0 : index
    %4 = vector.load %arg3[%c0_2, %c0_3] : memref<1x32xf32, #tpu.memory_space<vmem>>, vector<1x32xf32>
    %5 = vector.broadcast %4 : vector<1x32xf32> to vector<16x32xf32>
    %6 = arith.mulf %3, %5 : vector<16x32xf32>
    %cst = arith.constant dense<0.000000e+00> : vector<16xf32>
    %7 = vector.multi_reduction <add>, %6, %cst [1] : vector<16x32xf32> to vector<16xf32>
    %c0_4 = arith.constant 0 : index
    %c0_5 = arith.constant 0 : index
    %c0_6 = arith.constant 0 : index
    %8 = vector.load %arg5[%c0_4, %c0_5, %c0_6] : memref<1x1x16xf32, #tpu.memory_space<vmem>>, vector<1x1x16xf32>
    %9 = vector.shape_cast %7 : vector<16xf32> to vector<1x1x16xf32>
    %10 = arith.addf %8, %9 : vector<1x1x16xf32>
    %c0_7 = arith.constant 0 : index
    %c0_8 = arith.constant 0 : index
    %c0_9 = arith.constant 0 : index
    %11 = vector.load %arg5[%c0_7, %c0_8, %c0_9] : memref<1x1x16xf32, #tpu.memory_space<vmem>>, vector<1x1x16xf32>
    tpu.vector_store %arg5[%c0_7, %c0_8, %c0_9], %10 {strides = array<i32>} : memref<1x1x16xf32, #tpu.memory_space<vmem>>, vector<1x1x16xf32>,
    %c0_i32_10 = arith.constant 0 : i32
    %12 = arith.cmpi eq, %arg1, %c0_i32_10 : i32
    %13 = arith.extui %12 : i1 to i32
    %c0_i32_11 = arith.constant 0 : i32
    %14 = arith.cmpi ne, %13, %c0_i32_11 : i32
    scf.if %14 {
      %c0_12 = arith.constant 0 : index
      %c0_13 = arith.constant 0 : index
      %c0_14 = arith.constant 0 : index
      %15 = vector.load %arg5[%c0_12, %c0_13, %c0_14] : memref<1x1x16xf32, #tpu.memory_space<vmem>>, vector<1x1x16xf32>
      %c0_15 = arith.constant 0 : index
      %16 = memref.load %arg4[%c0_15] : memref<1xf32, #tpu.memory_space<smem>>
      %17 = vector.broadcast %16 : f32 to vector<1x1x16xf32>
      %18 = arith.addf %15, %17 : vector<1x1x16xf32>
      %19 = arith.negf %18 : vector<1x1x16xf32>
      %20 = math.exp %19 : vector<1x1x16xf32>
      %cst_16 = arith.constant 1.000000e+00 : f32
      %21 = vector.broadcast %cst_16 : f32 to vector<1x1x16xf32>
      %22 = arith.addf %21, %20 : vector<1x1x16xf32>
      %23 = arith.divf %21, %22 : vector<1x1x16xf32>
      %c0_17 = arith.constant 0 : index
      %c0_18 = arith.constant 0 : index
      %c0_19 = arith.constant 0 : index
      %24 = vector.load %arg5[%c0_17, %c0_18, %c0_19] : memref<1x1x16xf32, #tpu.memory_space<vmem>>, vector<1x1x16xf32>
      tpu.vector_store %arg5[%c0_17, %c0_18, %c0_19], %23 {strides = array<i32>} : memref<1x1x16xf32, #tpu.memory_space<vmem>>, vector<1x1x16xf32>,
    } else {
    }
    return
  }
  func.func @transform_0(%arg0: i32, %arg1: i32) -> (i32, i32) {
    %c0_i32 = arith.constant 0 : i32
    return %arg0, %arg1 : i32, i32
  }
  func.func @transform_1(%arg0: i32, %arg1: i32) -> (i32, i32) {
    %c0_i32 = arith.constant 0 : i32
    %c0_i32_0 = arith.constant 0 : i32
    return %c0_i32, %arg1 : i32, i32
  }
  func.func @transform_2(%arg0: i32, %arg1: i32) -> i32 {
    %c0_i32 = arith.constant 0 : i32
    %c0_i32_0 = arith.constant 0 : i32
    return %c0_i32 : i32
  }
  func.func @transform_3(%arg0: i32, %arg1: i32) -> (i32, i32, i32) {
    %c0_i32 = arith.constant 0 : i32
    %c0_i32_0 = arith.constant 0 : i32
    %c0_i32_1 = arith.constant 0 : i32
    return %arg0, %c0_i32, %c0_i32_0 : i32, i32, i32
  }
}

</mosaic_0001>

<bundles_post_ra>
// kernel: perceptron_forward.1
= control target key start
LH: loop header
LB: loop body
LE: loop exit
PB: predicated region body
PF: predicated region fallthrough
CT: control target
= control target key end

     0   :  { %9 = vsyncpa [#allocation4], 0  ;;  %s399_s0 = inlined_call_operand.hbm [shape: f32[16,32], index: 0, kind: input, shape index: {}]   ;;  %s400_s1 = inlined_call_operand.vmem [shape: f32[1,32], index: 1, kind: input, shape index: {}]   ;;  %s401_s2 = inlined_call_operand.<no memory space> [shape: f32[1], index: 2, kind: input, shape index: {}]   ;;  %s402_s3 = inlined_call_operand.hbm [shape: f32[1,1,16], index: 3, kind: output, shape index: {}]  }
   0x1   :  { %10 = vsyncpa [#allocation5], 0  ;;  %s344_s12 = smov [#allocation3]  }
   0x2   :  { %s16_s13 = sshll.u32 %s344_s12, 4  ;;  %s17_s13 = int_to_ptr.vmem [resolvable:$true] %s16_s13 }
   0x3   :  { %s308_s14 = scalar_lea.vmem %s17_s13, 256  ;;  %p313_p1 = scmp.lt.s32.totalorder %s17_s13, %s17_s13 }
   0x4   :  { %p309_p0 = scmp.ne.s32.totalorder %s17_s13, %s308_s14  ;;  %p314_p2 = scmp.lt.s32.totalorder %s308_s14, %s308_s14 }
   0x6   :  { %p315_p3 = por %p314_p2, %p313_p1 }
   0x8   :  { %p316_p4 = pnand %p315_p3, %p309_p0 }
   0xa   :  { %319 = shalt.err (!%p316_p4)
}
   0xb   :  { %s345_s15 = smov 128   ;;  %s346_s16 = smov 8  }
   0xc   :  { %22 = dma.hbm_to_vmem [thread:$0]  %s399_s0, 256, %s17_s13, [#allocation4], %s345_s15, %s345_s15, %s346_s16  }
   0xd   :  { %340 = dma.done.wait [#allocation4], 256  }
   0xe   :  { %341 = vsyncadd [#allocation4], 4294967040  ;;  %v36_v0 = vld [vmem:[#allocation3] sm:$0xff]  ;;  %vm47_vm0 = vcmask 261120   ;;  %v37_v2 = vld [vmem:[#allocation3 + $0x8] sm:$0xff]  ;;  %v347_v7 = vmov 0   ;;  %v57_v8 = vlaneseq }
   0xf   :  { %v285_v1 = vld [vmem:[%s400_s1] ss:$0 sm:$0xff]  ;;  %294 = vset.pattern.permute.xlu1 %v347_v7  ;;  %295 = vset.pattern.permute.xlu0 %v347_v7  ;;  %v348_v9 = vmov 1966171168   ;;  %vm34_vm1 = vcmask 122880   ;;  %v349_v62 = vmov 0.0  }
  0x10   :  { %v45_v3 = vmul.f32 %v285_v1, %v36_v0  ;;  %v46_v4 = vmul.f32 %v285_v1, %v37_v2  ;;  %v126_v10 = vunpack.c.l.s4 %v348_v9  ;;  %v377_v11 = vshrl.u32 %v57_v8, 7  ;;  %35 = vst.msk [vmem:[#allocation6] sm:$0x1] %vm34_vm1, %v349_v62  ;;  %s350_s21 = smov [#allocation6]  }
  0x11   :  { %vm236_vm2 = vcmask 130112   ;;  %s276_s22 = sshll.u32 %s350_s21, 4  ;;  %s277_s22 = int_to_ptr.vmem [resolvable:$true] %s276_s22 }
  0x12   :  { %v48_v5 = vsel %vm47_vm0, %v45_v3, 0.0  ;;  %v51_v6 = vsel %vm47_vm0, %v46_v4, 0.0  ;;  %v127_v12 = vunpack.c.0.s8 %v126_v10  ;;  %v59_v13 = vsub.s32 0, %v377_v11  ;;  %s320_s23 = scalar_lea.vmem %s277_s22, 16  ;;  %s324_s24 = scalar_lea.vmem %s277_s22, 32 }
  0x13   :  { %49 = vadd.xlane.f32.xlu0 %v48_v5  ;;  %v63_v14 = vsub.s32 1, %v377_v11  ;;  %v67_v15 = vsub.s32 2, %v377_v11  ;;  %v71_v16 = vsub.s32 3, %v377_v11  ;;  %v75_v17 = vsub.s32 4, %v377_v11  ;;  %p321_p5 = scmp.ne.s32.totalorder %s277_s22, %s320_s23  ;;  %p325_p6 = scmp.lt.s32.totalorder %s277_s22, %s277_s22 }
  0x14   :  { %v79_v18 = vsub.s32 5, %v377_v11  ;;  %v83_v19 = vsub.s32 6, %v377_v11  ;;  %v87_v20 = vsub.s32 7, %v377_v11  ;;  %v130_v22 = vsub.s32 %v127_v12, %v377_v11  ;;  %p326_p7 = scmp.lt.s32.totalorder %s324_s24, %s320_s23 }
  0x15   :  { %v226_v3 = vand.u32 127, %v57_v8  ;;  %v261_v8 = vstv %s401_s2 }
  0x16   :  { %p327_p8 = por %p326_p7, %p325_p6 }
  0x17   :  { %52 = vadd.xlane.f32.xlu0 %v51_v6  ;;  %v231_v4 = vadd.s32 4294967288, %v226_v3  ;;  %v229_v6 = vsub.s32 %v226_v3, %v377_v11 }
  0x18   :  { %p328_p9 = pnand %p327_p8, %p321_p5 }
  0x19   :  { %v234_v7 = vsub.s32 %v231_v4, %v377_v11 }
  0x9c   :  { %v50_v21 = vpop.xlane.xlu0 %49 }
  0x9d   :  { %v60_v23 = vrot.slane %v50_v21, %v59_v13  ;;  %v64_v24 = vrot.slane %v50_v21, %v63_v14  ;;  %v68_v25 = vrot.slane %v50_v21, %v67_v15  ;;  %v72_v26 = vrot.slane %v50_v21, %v71_v16 }
  0x9e   :  { %v76_v27 = vrot.slane %v50_v21, %v75_v17  ;;  %v80_v28 = vrot.slane %v50_v21, %v79_v18  ;;  %v84_v29 = vrot.slane %v50_v21, %v83_v19  ;;  %v88_v30 = vrot.slane %v50_v21, %v87_v20 }
  0x9f   :  { %v121_v31 = vcombine.low %v60_v23, %v64_v24  ;;  %v122_v32 = vcombine.low %v68_v25, %v72_v26 }
  0xa0   :  { %v53_v33 = vpop.xlane.xlu0 %52  ;;  %v123_v34 = vcombine.low %v76_v27, %v80_v28  ;;  %v124_v35 = vcombine.low %v84_v29, %v88_v30 }
  0xa1   :  { %v131_v36 = vrot.slane %v121_v31, %v130_v22  ;;  %v138_v37 = vrot.slane %v122_v32, %v130_v22  ;;  %v92_v38 = vrot.slane %v53_v33, %v59_v13  ;;  %v96_v39 = vrot.slane %v53_v33, %v63_v14 }
  0xa2   :  { %v145_v40 = vrot.slane %v123_v34, %v130_v22  ;;  %v152_v41 = vrot.slane %v124_v35, %v130_v22  ;;  %v100_v42 = vrot.slane %v53_v33, %v67_v15  ;;  %v104_v43 = vrot.slane %v53_v33, %v71_v16  ;;  %v54_v15 = vld [vmem:[#allocation6] sm:$0x1] }
  0xa3   :  { %v153_v44 = vcombine.low %v131_v36, %v138_v37  ;;  %v108_v45 = vrot.slane %v53_v33, %v75_v17  ;;  %v112_v46 = vrot.slane %v53_v33, %v79_v18  ;;  %v116_v47 = vrot.slane %v53_v33, %v83_v19 }
  0xa4   :  { %v154_v48 = vcombine.low %v145_v40, %v152_v41  ;;  %v120_v49 = vrot.slane %v53_v33, %v87_v20  ;;  %v170_v50 = vcombine.low %v92_v38, %v96_v39  ;;  %v171_v51 = vcombine.low %v100_v42, %v104_v43 }
  0xa5   :  { %v161_v52 = vrot.slane %v153_v44, %v130_v22  ;;  %v172_v53 = vcombine.low %v108_v45, %v112_v46 }
  0xa6   :  { %v168_v54 = vrot.slane %v154_v48, %v130_v22  ;;  %v173_v55 = vcombine.low %v116_v47, %v120_v49  ;;  %v180_v56 = vrot.slane %v170_v50, %v130_v22  ;;  %v187_v57 = vrot.slane %v171_v51, %v130_v22 }
  0xa7   :  { %v194_v58 = vrot.slane %v172_v53, %v130_v22 }
  0xa8   :  { %v169_v59 = vcombine.low %v161_v52, %v168_v54  ;;  %v201_v60 = vrot.slane %v173_v55, %v130_v22  ;;  %v202_v61 = vcombine.low %v180_v56, %v187_v57 }
  0xaa   :  { %220 = vperm.xlu1 %294, %v169_v59   ;;  %v203_v63 = vcombine.low %v194_v58, %v201_v60  ;;  %v210_v0 = vrot.slane %v202_v61, %v130_v22 }
  0xac   :  { %v217_v1 = vrot.slane %v203_v63, %v130_v22 }
  0xae   :  { %v218_v2 = vcombine.low %v210_v0, %v217_v1 }
  0xb0   :  { %223 = vperm.xlu1 %294, %v218_v2  }
 0x125   :  { %v221_v5 = vpop.permute.xlu1 %220 }
 0x126   :  { %v230_v10 = vrot.slane %v221_v5, %v229_v6 }
 0x12b   :  { %v224_v9 = vpop.permute.xlu1 %223 }
 0x12c   :  { %v235_v12 = vrot.slane %v224_v9, %v234_v7 }
 0x12e   :  { %v237_v13 = vsel %vm236_vm2, %v235_v12, %v230_v10 }
 0x12f   :  { %v244_v14 = vrot.slane %v237_v13, %v130_v22 }
 0x131   :  { %v251_v16 = vrot.slane %v244_v14, %v130_v22 }
 0x133   :  { %v253_v17 = vadd.f32 %v251_v16, %v54_v15 }
 0x135   :  { %255 = vst.msk [vmem:[#allocation6] sm:$0x1] %vm34_vm1, %v253_v17 }
 0x13c   :  { %v259_v18 = vld [vmem:[#allocation6] sm:$0x1] }
 0x13d   :  { %v262_v19 = vadd.f32 %v261_v8, %v259_v18 }
 0x13f   :  { %v286_v20 = vmul.f32 -1.442695, %v262_v19 }
 0x141   :  { %296 = vpow2.f32 %v286_v20 }
 0x14e   :  { %v297_v11 = vpop.eup %296 }
 0x14f   :  { %v266_v21 = vadd.f32 1.0, %v297_v11 }
 0x151   :  { %298 = vrcp.f32 %v266_v21 }
 0x15e   :  { %v299_v23 = vpop.eup %298 }
 0x15f   :  { %269 = vst.msk [vmem:[#allocation6] sm:$0x1] %vm34_vm1, %v299_v23 }
 0x160   :  { %331 = shalt.err (!%p328_p9)
}
 0x161   :  { %279 = dma.vmem_to_hbm [thread:$0]  %s277_s22, 16, %s402_s3, [#allocation5]  }
 0x162   :  { %342 = dma.done.wait [#allocation5], 16  }
 0x163   :  { %343 = vsyncadd [#allocation5], 4294967280 }
 0x164   :  { %283 = vsyncpa [#allocation4], 1 }
 0x165   :  { %284 = vsyncpa [#allocation5], 1 }

</bundles_post_ra>
